<compile_context>
chip_gen: v7x
topology: tpu7x:2x2x1
jax: 0.10.0
libtpu: 0.0.40
codegen_flags: <defaults>
</compile_context>

<pallas_src>
import functools
import math

import jax
import jax.numpy as jnp
from jax.experimental import pallas as pl
from jax.experimental.pallas import tpu as pltpu

_PARAM_DTYPE = jnp.bfloat16


def _round_up(x, m):
    return (x + m - 1) // m * m


def _device_kind():
    try:
        return jax.devices()[0].device_kind.lower()
    except Exception:  # pragma: no cover - no accelerator visible
        return ""


# --------------------------------------------------------------------------- #
# Kernels
# --------------------------------------------------------------------------- #
def _linear_bias_kernel(x_ref, w_ref, b_ref, o_ref):
    """Fast path: whole K fits in one tile -> no scratch, no k loop."""
    acc = jnp.dot(x_ref[...], w_ref[...], preferred_element_type=jnp.float32)
    o_ref[...] = (acc + b_ref[...]).astype(o_ref.dtype)


def _linear_bias_acc_kernel(x_ref, w_ref, b_ref, o_ref, acc_ref):
    """General path: accumulate over the K grid axis (reduction axis last)."""
    k = pl.program_id(2)

    @pl.when(k == 0)
    def _():
        # Seed the accumulator with the bias -> no zero-fill, no epilogue add.
        acc_ref[...] = jnp.broadcast_to(
            b_ref[...].astype(jnp.float32), acc_ref.shape)

    acc_ref[...] += jnp.dot(x_ref[...], w_ref[...],
                            preferred_element_type=jnp.float32)

    @pl.when(k == pl.num_programs(2) - 1)
    def _():
        o_ref[...] = acc_ref[...].astype(o_ref.dtype)


# --------------------------------------------------------------------------- #
# Tiling plan (per-generation VMEM budget, lane-dense tiles, few M tiles)
# --------------------------------------------------------------------------- #
def make_plan(B, K, C, *, tm_max=512, tn_max=512, tk_max=2048,
              param_dtype=_PARAM_DTYPE, out_dtype=jnp.float32):
    kind = _device_kind()
    is_v7 = "v7" in kind
    # v7x: 64 MiB physical VMEM -> keep buffered tiles under ~48 MiB.
    # v5e/v6e: 128 MiB physical -> allow up to ~100 MiB.
    budget = (48 << 20) if (is_v7 or kind == "") else (100 << 20)

    x_b = jnp.dtype(param_dtype).itemsize
    w_b = jnp.dtype(param_dtype).itemsize
    o_b = jnp.dtype(out_dtype).itemsize

    # bf16 sublane packing -> align M to 16; lane-dense (128) K and N.
    tm = min(tm_max, _round_up(B, 16))
    tk = min(tk_max, _round_up(K, 128))
    tn = min(tn_max, _round_up(C, 128))

    def footprint(tm_, tk_, tn_):
        # double-buffered x, W, bias, out tiles + single f32 accumulator
        return (2 * tm_ * tk_ * x_b + 2 * tk_ * tn_ * w_b + 2 * tn_ * 4
                + 2 * tm_ * tn_ * o_b + tm_ * tn_ * 4)

    while footprint(tm, tk, tn) > budget and tk > 128:
        tk = max(128, tk // 2)
    while footprint(tm, tk, tn) > budget and tn > 128:
        tn = max(128, tn // 2)
    while footprint(tm, tk, tn) > budget and tm > 16:
        tm = max(16, tm // 2)

    Bp, Kp, Cp = _round_up(B, tm), _round_up(K, tk), _round_up(C, tn)

    # v7x has 2 TensorCores: make sure at least one parallel grid axis has
    # extent >= 2 when the output is wide enough to split lane-densely.
    if is_v7 and (Bp // tm) < 2 and (Cp // tn) < 2 and Cp >= 256:
        tn = _round_up(Cp // 2, 128)
        Cp = _round_up(C, tn)

    return dict(tm=tm, tk=tk, tn=tn, Bp=Bp, Kp=Kp, Cp=Cp,
                vmem_limit=budget, param_dtype=param_dtype,
                out_dtype=out_dtype)


# --------------------------------------------------------------------------- #
# One-time parameter prep (hoisted out of the per-step hot path)
# --------------------------------------------------------------------------- #
def prepare_params(weight, bias, plan):
    """weight: [C, K] (PyTorch layout), bias: [C] -> padded [Kp, Cp] bf16 + [1, Cp] f32."""
    C, K = weight.shape
    Kp, Cp = plan["Kp"], plan["Cp"]
    w_t = weight.T.astype(plan["param_dtype"])            # [K, C] once, at prep time
    if (Kp, Cp) != (K, C):
        w_t = jnp.pad(w_t, ((0, Kp - K), (0, Cp - C)))
    b_row = bias.astype(jnp.float32).reshape(1, C)
    if Cp != C:
        b_row = jnp.pad(b_row, ((0, 0), (0, Cp - C)))
    return w_t, b_row


# --------------------------------------------------------------------------- #
# Forward
# --------------------------------------------------------------------------- #
def predict_head_all_prepared(x, w_t, b_row, *, plan):
    """x: [B, L, D]; w_t: [Kp, Cp] (prepared); b_row: [1, Cp]. Returns [B, C] f32."""
    B, L, D = x.shape
    K = L * D
    C = b_row.shape[1] if plan.get("C") is None else plan["C"]
    tm, tk, tn = plan["tm"], plan["tk"], plan["tn"]
    Bp, Kp, Cp = plan["Bp"], plan["Kp"], plan["Cp"]
    out_dtype = plan["out_dtype"]

    x_flat = x.reshape(B, K).astype(plan["param_dtype"])
    if (Bp, Kp) != (B, K):
        x_flat = jnp.pad(x_flat, ((0, Bp - B), (0, Kp - K)))

    grid_i, grid_j, grid_k = Bp // tm, Cp // tn, Kp // tk
    x_bytes = jnp.dtype(plan["param_dtype"]).itemsize
    w_bytes = jnp.dtype(w_t.dtype).itemsize
    o_bytes = jnp.dtype(out_dtype).itemsize
    cost = pl.CostEstimate(
        flops=2 * Bp * Kp * Cp,
        transcendentals=0,
        bytes_accessed=(Bp * Kp * x_bytes * grid_j      # x re-streamed per N tile
                        + Kp * Cp * w_bytes * grid_i    # W re-streamed per M tile
                        + Cp * 4 * grid_i               # bias
                        + Bp * Cp * o_bytes),           # output written once
    )
    compiler_params = pltpu.CompilerParams(
        dimension_semantics=(("parallel", "parallel") if grid_k == 1
                             else ("parallel", "parallel", "arbitrary")),
        vmem_limit_bytes=plan["vmem_limit"],
    )

    if grid_k == 1:
        out = pl.pallas_call(
            _linear_bias_kernel,
            out_shape=jax.ShapeDtypeStruct((Bp, Cp), out_dtype),
            grid_spec=pltpu.PrefetchScalarGridSpec(
                num_scalar_prefetch=0,
                grid=(grid_i, grid_j),
                in_specs=[
                    pl.BlockSpec((tm, Kp), lambda i, j: (i, 0)),   # x tile (full K)
                    pl.BlockSpec((Kp, tn), lambda i, j: (0, j)),   # W.T tile (full K)
                    pl.BlockSpec((1, tn), lambda i, j: (0, j)),    # bias tile
                ],
                out_specs=pl.BlockSpec((tm, tn), lambda i, j: (i, j)),
            ),
            compiler_params=compiler_params,
            cost_estimate=cost,
        )(x_flat, w_t, b_row)
    else:
        out = pl.pallas_call(
            _linear_bias_acc_kernel,
            out_shape=jax.ShapeDtypeStruct((Bp, Cp), out_dtype),
            grid_spec=pltpu.PrefetchScalarGridSpec(
                num_scalar_prefetch=0,
                grid=(grid_i, grid_j, grid_k),
                in_specs=[
                    pl.BlockSpec((tm, tk), lambda i, j, k: (i, k)),   # x tile
                    pl.BlockSpec((tk, tn), lambda i, j, k: (k, j)),   # W.T tile
                    pl.BlockSpec((1, tn), lambda i, j, k: (0, j)),    # bias tile
                ],
                out_specs=pl.BlockSpec((tm, tn), lambda i, j, k: (i, j)),
                scratch_shapes=[pltpu.VMEM((tm, tn), jnp.float32)],
            ),
            compiler_params=compiler_params,
            cost_estimate=cost,
        )(x_flat, w_t, b_row)

    return out[:B, : b_row.shape[1] if "C" not in plan else plan["C"]][:, :plan.get("C", b_row.shape[1])]


def predict_head_all(x, weight, bias):
    """Convenience one-shot wrapper (hot paths should call prepare_params once)."""
    B, L, D = x.shape
    C, K = weight.shape
    plan = make_plan(B, K, C)
    plan["C"] = C
    w_t, b_row = prepare_params(weight, bias, plan)
    return predict_head_all_prepared(x, w_t, b_row, plan=plan)


# --------------------------------------------------------------------------- #
# Example / self-test
# --------------------------------------------------------------------------- #
if __name__ == "__main__":
    # batch=2, length(len)=8, dim(n_cluster)=32 -> in_features=256, num_class=128
    B, L, D, C = 2, 8, 32, 128

    key = jax.random.PRNGKey(0)
    kx, kw, kb = jax.random.split(key, 3)

    in_features = L * D
    bound = 1.0 / math.sqrt(in_features)   # nn.Linear default init range

    x = jax.random.normal(kx, (B, L, D), jnp.float32)
    weight = jax.random.uniform(kw, (C, in_features), jnp.float32, -bound, bound)
    bias = jax.random.uniform(kb, (C,), jnp.float32, -bound, bound)

    # One-time parameter prep (hoisted out of the per-step hot path).
    plan = make_plan(B, in_features, C)
    plan["C"] = C
    w_prep, b_prep = prepare_params(weight, bias, plan)
    w_prep, b_prep = jax.block_until_ready((w_prep, b_prep))

    fwd = jax.jit(functools.partial(predict_head_all_prepared, plan=plan))
    out = jax.block_until_ready(fwd(x, w_prep, b_prep))

    ref = x.reshape(B, -1) @ weight.T + bias   # f32 reference (kernel uses bf16 inputs)
    assert out.shape == (B, C), out.shape
    err = jnp.max(jnp.abs(out - ref))
    assert jnp.allclose(out, ref, atol=3e-2, rtol=3e-2), f"max abs err {err}"

    print("KERNEL_OK")
</pallas_src>

<mosaic_0001>
module attributes {stable_mosaic.version = 11 : i64} {
  func.func @_linear_bias_kernel(%arg0: i32, %arg1: i32, %arg2: memref<16x256xbf16, #tpu.memory_space<vmem>>, %arg3: memref<256x128xbf16, #tpu.memory_space<vmem>>, %arg4: memref<1x128xf32, #tpu.memory_space<vmem>>, %arg5: memref<16x128xf32, #tpu.memory_space<vmem>>) attributes {dimension_semantics = [#tpu.dimension_semantics<parallel>, #tpu.dimension_semantics<parallel>], iteration_bounds = array<i64: 1, 1>, scalar_prefetch = 0 : i64, scratch_operands = 0 : i64, tpu.core_type = #tpu.core_type<tc>, window_params = [{transform_indices = @transform_0, window_bounds = array<i64: 16, 256>}, {transform_indices = @transform_1, window_bounds = array<i64: 256, 128>}, {transform_indices = @transform_2, window_bounds = array<i64: 1, 128>}, {transform_indices = @transform_3, window_bounds = array<i64: 16, 128>}]} {
    %c0 = arith.constant 0 : index
    %c0_0 = arith.constant 0 : index
    %0 = vector.load %arg2[%c0, %c0_0] : memref<16x256xbf16, #tpu.memory_space<vmem>>, vector<16x256xbf16>
    %c0_1 = arith.constant 0 : index
    %c0_2 = arith.constant 0 : index
    %1 = vector.load %arg3[%c0_1, %c0_2] : memref<256x128xbf16, #tpu.memory_space<vmem>>, vector<256x128xbf16>
    %cst = arith.constant dense<0.000000e+00> : vector<16x128xf32>
    %2 = tpu.matmul %0, %1, %cst {dimension_numbers = #tpu.dot_dimension_numbers<[1], [0], [0], [1], [0, 0, 1, 1], [], []>} : vector<16x256xbf16>, vector<256x128xbf16>, vector<16x128xf32> -> vector<16x128xf32>
    %c0_3 = arith.constant 0 : index
    %c0_4 = arith.constant 0 : index
    %3 = vector.load %arg4[%c0_3, %c0_4] : memref<1x128xf32, #tpu.memory_space<vmem>>, vector<1x128xf32>
    %4 = vector.broadcast %3 : vector<1x128xf32> to vector<16x128xf32>
    %5 = arith.addf %2, %4 : vector<16x128xf32>
    %c0_5 = arith.constant 0 : index
    %c0_6 = arith.constant 0 : index
    %6 = vector.load %arg5[%c0_5, %c0_6] : memref<16x128xf32, #tpu.memory_space<vmem>>, vector<16x128xf32>
    tpu.vector_store %arg5[%c0_5, %c0_6], %5 {strides = array<i32>} : memref<16x128xf32, #tpu.memory_space<vmem>>, vector<16x128xf32>,
    return
  }
  func.func @transform_0(%arg0: i32, %arg1: i32) -> (i32, i32) {
    %c0_i32 = arith.constant 0 : i32
    %c0_i32_0 = arith.constant 0 : i32
    return %arg0, %c0_i32 : i32, i32
  }
  func.func @transform_1(%arg0: i32, %arg1: i32) -> (i32, i32) {
    %c0_i32 = arith.constant 0 : i32
    %c0_i32_0 = arith.constant 0 : i32
    return %c0_i32, %arg1 : i32, i32
  }
  func.func @transform_2(%arg0: i32, %arg1: i32) -> (i32, i32) {
    %c0_i32 = arith.constant 0 : i32
    %c0_i32_0 = arith.constant 0 : i32
    return %c0_i32, %arg1 : i32, i32
  }
  func.func @transform_3(%arg0: i32, %arg1: i32) -> (i32, i32) {
    %c0_i32 = arith.constant 0 : i32
    return %arg0, %arg1 : i32, i32
  }
}

</mosaic_0001>

<bundles_post_ra>
// kernel: predict_head_all_prepared.1
= control target key start
LH: loop header
LB: loop body
LE: loop exit
PB: predicated region body
PF: predicated region fallthrough
CT: control target
= control target key end

     0   :  { %8 = vsyncpa [#allocation3], 0  ;;  %s507_s0 = inlined_call_operand.hbm [shape: bf16[16,256], index: 0, kind: input, shape index: {}]   ;;  %s508_s1 = inlined_call_operand.hbm [shape: bf16[256,128], index: 1, kind: input, shape index: {}]   ;;  %s509_s2 = inlined_call_operand.hbm [shape: f32[1,128], index: 2, kind: input, shape index: {}]   ;;  %s510_s3 = inlined_call_operand.hbm [shape: f32[16,128], index: 3, kind: output, shape index: {}]  }
   0x1   :  { %9 = vsyncpa [#allocation6], 0 }
   0x2   :  { %10 = vsyncpa [#allocation4], 0  ;;  %s425_s12 = smov [#allocation5]   ;;  %s331_s16 = scalar_lea.hbm %s508_s1, 2048 }
   0x3   :  { %s28_s13 = sshll.u32 %s425_s12, 4  ;;  %p332_p0 = scmp.ne.s32.totalorder %s508_s1, %s331_s16  ;;  %s29_s13 = int_to_ptr.vmem [resolvable:$true] %s28_s13 }
   0x4   :  { %p335_p1 = scmp.lt.u32.totalorder %s331_s16, %s508_s1 }
   0x6   :  { %p337_p2 = pnand %p335_p1, %p332_p0 }
   0x8   :  { %340 = shalt.err (!%p337_p2)
}
   0x9   :  { %s341_s21 = scalar_lea.vmem %s29_s13, 2048  ;;  %p346_p4 = scmp.lt.s32.totalorder %s29_s13, %s29_s13 }
   0xa   :  { %p342_p3 = scmp.ne.s32.totalorder %s29_s13, %s341_s21  ;;  %p347_p5 = scmp.lt.s32.totalorder %s341_s21, %s341_s21 }
   0xc   :  { %p348_p6 = por %p347_p5, %p346_p4 }
   0xe   :  { %p349_p7 = pnand %p348_p6, %p342_p3 }
  0x10   :  { %352 = shalt.err (!%p349_p7)
}
  0x11   :  { %s426_s22 = smov 64   ;;  %s427_s23 = smov 4  }
  0x12   :  { %34 = dma.hbm_to_vmem [thread:$0]  %s508_s1, 2048, %s29_s13, [#allocation6], %s426_s22, %s426_s22, %s427_s23  }
  0x13   :  { %s428_s26 = smov [#allocation2]   ;;  %s353_s30 = scalar_lea.hbm %s507_s0, 256 }
  0x14   :  { %s16_s27 = sshll.u32 %s428_s26, 4  ;;  %p354_p8 = scmp.ne.s32.totalorder %s507_s0, %s353_s30  ;;  %s17_s27 = int_to_ptr.vmem [resolvable:$true] %s16_s27 }
  0x15   :  { %p357_p9 = scmp.lt.u32.totalorder %s353_s30, %s507_s0 }
  0x17   :  { %p359_p10 = pnand %p357_p9, %p354_p8 }
  0x19   :  { %362 = shalt.err (!%p359_p10)
}
  0x1a   :  { %s363_s8 = scalar_lea.vmem %s17_s27, 256  ;;  %p368_p12 = scmp.lt.s32.totalorder %s17_s27, %s17_s27 }
  0x1b   :  { %p364_p11 = scmp.ne.s32.totalorder %s17_s27, %s363_s8  ;;  %p369_p13 = scmp.lt.s32.totalorder %s363_s8, %s363_s8 }
  0x1d   :  { %p370_p0 = por %p369_p13, %p368_p12 }
  0x1f   :  { %p371_p1 = pnand %p370_p0, %p364_p11 }
  0x21   :  { %374 = shalt.err (!%p371_p1)
}
  0x22   :  { %s429_s1 = smov 128   ;;  %s430_s9 = smov 8  }
  0x23   :  { %22 = dma.hbm_to_vmem [thread:$0]  %s507_s0, 256, %s17_s27, [#allocation3], %s429_s1, %s429_s1, %s430_s9  }
  0x24   :  { %s431_s12 = smov [#allocation7]   ;;  %s375_s16 = scalar_lea.hbm %s509_s2, 16 }
  0x25   :  { %s41_s13 = sshll.u32 %s431_s12, 4  ;;  %p376_p2 = scmp.ne.s32.totalorder %s509_s2, %s375_s16  ;;  %s42_s13 = int_to_ptr.vmem [resolvable:$true] %s41_s13 }
  0x26   :  { %p379_p3 = scmp.lt.u32.totalorder %s375_s16, %s509_s2 }
  0x28   :  { %p381_p4 = pnand %p379_p3, %p376_p2 }
  0x2a   :  { %384 = shalt.err (!%p381_p4)
}
  0x2b   :  { %s385_s21 = scalar_lea.vmem %s42_s13, 16  ;;  %s389_s0 = scalar_lea.vmem %s42_s13, 32 }
  0x2c   :  { %p386_p5 = scmp.ne.s32.totalorder %s42_s13, %s385_s21  ;;  %p390_p6 = scmp.lt.s32.totalorder %s42_s13, %s42_s13 }
  0x2d   :  { %p391_p7 = scmp.lt.s32.totalorder %s389_s0, %s385_s21 }
  0x2f   :  { %p392_p8 = por %p391_p7, %p390_p6 }
  0x31   :  { %p393_p9 = pnand %p392_p8, %p386_p5 }
  0x33   :  { %396 = shalt.err (!%p393_p9)
}
  0x34   :  { %44 = dma.hbm_to_vmem [thread:$0]  %s509_s2, 16, %s42_s13, [#allocation6]  }
  0x35   :  { %419 = dma.done.wait [#allocation3], 256  }
  0x36   :  { %420 = vsyncadd [#allocation3], 4294967040 }
  0x37   :  { %421 = dma.done.wait [#allocation6], 2064  }
  0x38   :  { %422 = vsyncadd [#allocation6], 4294965232  ;;  %v312_v0 = vld [vmem:[#allocation5 + $0x40] sm:$0xff]   ;;  %v314_v2 = vld [vmem:[#allocation5 + $0x48] sm:$0xff]   ;;  %s432_s2 = smov [#allocation8]  }
  0x39   :  { %v313_v1 = vld [vmem:[#allocation5] sm:$0xff]   ;;  %282 = vmatprep.subr.bf16.mxu0 %v312_v0  ;;  %v315_v3 = vld [vmem:[#allocation5 + $0x8] sm:$0xff]   ;;  %v316_v4 = vld [vmem:[#allocation5 + $0x50] sm:$0xff]   ;;  %s250_s24 = sshll.u32 %s432_s2, 4  ;;  %s251_s24 = int_to_ptr.vmem [resolvable:$true] %s250_s24 }
  0x3a   :  { %283 = vmatpush3.bf16.msra.mxu0 %v313_v1  ;;  %v317_v5 = vld [vmem:[#allocation5 + $0x10] sm:$0xff]   ;;  %v318_v6 = vld [vmem:[#allocation5 + $0x58] sm:$0xff]   ;;  %v320_v8 = vld [vmem:[#allocation5 + $0x60] sm:$0xff]   ;;  %s397_s25 = scalar_lea.vmem %s251_s24, 256  ;;  %p402_p11 = scmp.lt.s32.totalorder %s251_s24, %s251_s24 }
  0x3b   :  { %284 = vmatprep.subr.bf16.mxu0 %v314_v2  ;;  %v319_v7 = vld [vmem:[#allocation5 + $0x18] sm:$0xff]   ;;  %v321_v9 = vld [vmem:[#allocation5 + $0x20] sm:$0xff]   ;;  %v322_v10 = vld [vmem:[#allocation5 + $0x68] sm:$0xff]   ;;  %p398_p10 = scmp.ne.s32.totalorder %s251_s24, %s397_s25  ;;  %p403_p12 = scmp.lt.s32.totalorder %s397_s25, %s397_s25 }
  0x3c   :  { %v330_v11 = vld [vmem:[#allocation2 + $0x4] ss:$8 sps:$4 sm:$0xff]   ;;  %v323_v12 = vld [vmem:[#allocation5 + $0x28] sm:$0xff]   ;;  %v328_v17 = vld [vmem:[#allocation2] ss:$8 sps:$4 sm:$0xff]  }
  0x3d   :  { %234 = vmatprep.mubr.bf16.mxu0 %v330_v11  ;;  %v324_v13 = vld [vmem:[#allocation5 + $0x70] sm:$0xff]   ;;  %v326_v15 = vld [vmem:[#allocation5 + $0x78] sm:$0xff]   ;;  %v263_v19 = vld [vmem:[#allocation7] ss:$0 sm:$0xff]  ;;  %p404_p13 = por %p403_p12, %p402_p11 }
  0x3e   :  { %285 = vmatpush3.bf16.msra.mxu0 %v315_v3  ;;  %v325_v14 = vld [vmem:[#allocation5 + $0x30] sm:$0xff]   ;;  %v327_v16 = vld [vmem:[#allocation5 + $0x38] sm:$0xff]  }
  0x3f   :  { %286 = vmatprep.subr.bf16.mxu0 %v316_v4  ;;  %p405_p0 = pnand %p404_p13, %p398_p10 }
  0x42   :  { %287 = vmatpush3.bf16.msra.mxu0 %v317_v5 }
  0x43   :  { %288 = vmatprep.subr.bf16.mxu0 %v318_v6 }
  0x46   :  { %289 = vmatpush3.bf16.msra.mxu0 %v319_v7 }
  0x47   :  { %290 = vmatprep.subr.bf16.mxu0 %v320_v8 }
  0x4a   :  { %291 = vmatpush3.bf16.msra.mxu0 %v321_v9 }
  0x4b   :  { %292 = vmatprep.subr.bf16.mxu0 %v322_v10 }
  0x4e   :  { %293 = vmatpush3.bf16.msra.mxu0 %v323_v12 }
  0x4f   :  { %294 = vmatprep.subr.bf16.mxu0 %v324_v13 }
  0x52   :  { %295 = vmatpush3.bf16.msra.mxu0 %v325_v14 }
  0x53   :  { %296 = vmatprep.subr.bf16.mxu0 %v326_v15 }
  0x56   :  { %297 = vmatpush3.bf16.msra.mxu0 %v327_v16 }
  0x59   :  { %235 = vmatmul.mubr.bf16.vlgmr.msra.gmra.mrb[0].mxu0 %v328_v17 }
 0x12c   :  { %v298_v18 = vpop.f32.mrb[0].mxu0 }
 0x12d   :  { %v299_v20 = vpop.f32.mrb[1].mxu0 }
 0x12e   :  { %v300_v21 = vadd.f32 %v299_v20, %v298_v18  ;;  %v301_v22 = vpop.f32.mrb[2].mxu0 }
 0x12f   :  { %v302_v23 = vpop.f32.mrb[3].mxu0 }
 0x130   :  { %v237_v24 = vadd.f32 %v300_v21, %v263_v19  ;;  %v303_v25 = vadd.f32 %v302_v23, %v301_v22 }
 0x132   :  { %243 = vst [vmem:[#allocation8] sm:$0xff] %v237_v24  ;;  %v240_v26 = vadd.f32 %v303_v25, %v263_v19 }
 0x134   :  { %244 = vst [vmem:[#allocation8 + $0x8] sm:$0xff] %v240_v26 }
 0x135   :  { %408 = shalt.err (!%p405_p0)
}
 0x136   :  { %s409_s28 = scalar_lea.hbm %s510_s3, 256 }
 0x137   :  { %p410_p1 = scmp.ne.s32.totalorder %s510_s3, %s409_s28  ;;  %p413_p2 = scmp.lt.u32.totalorder %s409_s28, %s510_s3 }
 0x139   :  { %p415_p3 = pnand %p413_p2, %p410_p1 }
 0x13b   :  { %418 = shalt.err (!%p415_p3)
}
 0x13c   :  { %256 = dma.vmem_to_hbm [thread:$0]  %s251_s24, 256, %s510_s3, [#allocation4], %s429_s1, %s429_s1, %s430_s9  }
 0x13d   :  { %423 = dma.done.wait [#allocation4], 256  }
 0x13e   :  { %424 = vsyncadd [#allocation4], 4294967040 }
 0x13f   :  { %260 = vsyncpa [#allocation3], 1 }
 0x140   :  { %261 = vsyncpa [#allocation6], 1 }
 0x141   :  { %262 = vsyncpa [#allocation4], 1 }

</bundles_post_ra>
